<compile_context>
chip_gen: v7x
topology: tpu7x:2x2x1
jax: 0.10.0
libtpu: 0.0.40
codegen_flags: <defaults>
</compile_context>

<pallas_src>
import math

import jax
import jax.numpy as jnp
from jax.experimental import pallas as pl
from jax.experimental.pallas import tpu as pltpu


_LANE = 128
_DEFAULT_LANE_CAP = 8192              # max lanes per block (32 KiB per f32 row)
_MIN_SPLIT_BYTES = 2 * 1024 * 1024    # force >=2 parallel chunks above this (megacore)


def _cdiv(a, b):
    return -(-a // b)


def _round_up(x, m):
    return ((x + m - 1) // m) * m


def _hw_plan():
    """(per-step tile byte budget, vmem_limit_bytes) sized from the local TPU."""
    vmem_cap = 64 * 1024 * 1024        # conservative fallback (v7x-sized)
    try:
        info = pltpu.get_tpu_info()
        cap = getattr(info, "vmem_capacity_bytes", None)
        if cap:
            vmem_cap = int(cap)
    except Exception:
        pass
    tile_bytes = max(2 * 1024 * 1024, min(16 * 1024 * 1024, vmem_cap // 8))
    vmem_limit = max(32 * 1024 * 1024, min(vmem_cap * 5 // 8, 64 * 1024 * 1024))
    return tile_bytes, vmem_limit


def _make_sumsq_kernel(tile_s, tile_p, n_rows, n_lanes, s_axis, p_axis,
                       need_row_mask, need_lane_mask):
    """Kernel accumulating per-lane sum((pred - target)^2) over the inner grid axis."""

    def kernel(preds_ref, targ_ref, out_ref):
        # Grid axis 1 is the sequential ("arbitrary") accumulation axis; the output
        # block index is constant along it -> resident accumulator, init on step 0.
        @pl.when(pl.program_id(1) == 0)
        def _init():
            out_ref[...] = jnp.zeros_like(out_ref)

        d = preds_ref[...].astype(jnp.float32) - targ_ref[...]     # (tile_s, tile_p)
        dd = d * d
        # Masks only exist (trace-time gate) when a block can hang off the array edge;
        # jnp.where also squashes any NaN/Inf garbage from the padded region to 0.
        if need_row_mask:
            rows = jax.lax.broadcasted_iota(jnp.int32, (tile_s, tile_p), 0)
            dd = jnp.where(rows < (n_rows - pl.program_id(s_axis) * tile_s), dd, 0.0)
        if need_lane_mask:
            lanes = jax.lax.broadcasted_iota(jnp.int32, (tile_s, tile_p), 1)
            dd = jnp.where(lanes < (n_lanes - pl.program_id(p_axis) * tile_p), dd, 0.0)

        out_ref[...] += jnp.sum(dd, axis=0, keepdims=True)[None]   # per-lane partials

    return kernel


def regression_elbo_loss(model_out, targets, *, batch_num, noise_tol=0.1,
                         tile_bytes=None, lane_cap=_DEFAULT_LANE_CAP,
                         vmem_limit_bytes=None):
    """Pallas TPU implementation of RegressionELBOLoss.forward.

    model_out = (model_preds_s, log_prior, log_va_poster); model_preds_s is either a
    pre-stacked (S, ...) array (preferred) or a list/tuple of per-sample predictions.
    """
    model_preds_s, log_prior, log_va_poster = model_out
    if isinstance(model_preds_s, (list, tuple)):
        preds = jnp.stack([jnp.asarray(p) for p in model_preds_s], axis=0)
    else:
        preds = jnp.asarray(model_preds_s)
    # Keep bf16/f16/f32 as-is (mem-bound: narrow dtypes halve streamed HBM bytes);
    # anything else is cast once to f32.
    if not (jnp.issubdtype(preds.dtype, jnp.floating) and preds.dtype.itemsize in (2, 4)):
        preds = preds.astype(jnp.float32)

    targ = jnp.asarray(targets, jnp.float32)
    num_samples = int(preds.shape[0])
    bd = int(targ.size)

    preds2d = preds.reshape(num_samples, bd)     # metadata-only reshape (no HBM pass)
    targ2d = targ.reshape(1, bd)

    default_tile_bytes, default_vmem = _hw_plan()
    if tile_bytes is None:
        tile_bytes = default_tile_bytes
    if vmem_limit_bytes is None:
        vmem_limit_bytes = default_vmem
    lane_cap = max(_LANE, (int(lane_cap) // _LANE) * _LANE)

    itemsize = preds2d.dtype.itemsize
    sub = 16 if itemsize == 2 else 8             # sublane packing granularity

    # --- lane tiling: bounds the resident targets row + per-lane accumulator ---
    if bd <= lane_cap:
        tile_p, num_p = bd, 1                    # full-extent last dim: always legal
    else:
        tile_p = lane_cap
        num_p = _cdiv(bd, tile_p)

    # --- sample tiling: big tiles hide the per-grid-step overhead ---
    row_bytes = max(1, tile_p * itemsize)
    rows = max(sub, (tile_bytes // row_bytes) // sub * sub)
    if rows >= num_samples:
        tile_s, num_s = num_samples, 1
    else:
        tile_s = rows
        num_s = _cdiv(num_samples, tile_s)

    # v7x megacore: a 1-chunk grid idles one TensorCore; split anything big in two.
    if num_s == 1 and num_p == 1 and num_samples * bd * itemsize > _MIN_SPLIT_BYTES:
        if num_samples >= 2 * sub:
            tile_s = _round_up(_cdiv(num_samples, 2), sub)
            num_s = _cdiv(num_samples, tile_s)
        elif bd >= 2 * _LANE:
            tile_p = _round_up(_cdiv(bd, 2), _LANE)
            num_p = _cdiv(bd, tile_p)

    need_row_mask = (num_s * tile_s != num_samples)
    need_lane_mask = (num_p * tile_p != bd)

    # --- grid orientation: parallel axis first, accumulation axis second ---
    if num_s >= 2:
        grid = (num_s, num_p)                    # parallel over sample chunks
        s_axis, p_axis = 0, 1
        preds_map = lambda i, j: (i, j)
        targ_map = lambda i, j: (0, j)
        out_map = lambda i, j: (i, 0, 0)
        out_rows = num_s
    else:
        grid = (num_p, num_s)                    # parallel over lane chunks
        s_axis, p_axis = 1, 0
        preds_map = lambda i, j: (j, i)
        targ_map = lambda i, j: (0, i)
        out_map = lambda i, j: (i, 0, 0)
        out_rows = num_p

    kernel = _make_sumsq_kernel(tile_s, tile_p, num_samples, bd, s_axis, p_axis,
                                need_row_mask, need_lane_mask)

    partials = pl.pallas_call(
        kernel,
        out_shape=jax.ShapeDtypeStruct((out_rows, 1, tile_p), jnp.float32),
        grid_spec=pltpu.PrefetchScalarGridSpec(
            num_scalar_prefetch=0,
            grid=grid,
            in_specs=[
                pl.BlockSpec((tile_s, tile_p), preds_map),    # streamed predictions
                pl.BlockSpec((1, tile_p), targ_map),          # small targets row
            ],
            out_specs=pl.BlockSpec((1, 1, tile_p), out_map),  # resident accumulator
        ),
        compiler_params=pltpu.CompilerParams(
            dimension_semantics=("parallel", "arbitrary"),
            vmem_limit_bytes=int(vmem_limit_bytes)),
    )(preds2d, targ2d)

    # Tiny scalar epilogue: collapse the small per-chunk per-lane partials, add the
    # hoisted Normal.log_prob constant, and combine with the KL-ish term.
    sigma = float(noise_tol)
    inv_two_sigma_sq = 1.0 / (2.0 * sigma * sigma)
    log_norm_const = math.log(sigma) + 0.5 * math.log(2.0 * math.pi)
    sumsq = jnp.sum(partials)
    log_like = -inv_two_sigma_sq * sumsq - jnp.float32(num_samples * bd * log_norm_const)
    kl_term = (jnp.asarray(log_va_poster, jnp.float32)
               - jnp.asarray(log_prior, jnp.float32)) / jnp.float32(batch_num)
    return kl_term - log_like / jnp.float32(num_samples)


def _reference(preds, log_prior, log_va_poster, targets, *, batch_num, noise_tol):
    """Pure-JAX reference matching torch.distributions.Normal.log_prob semantics."""
    sigma = float(noise_tol)
    p = jnp.asarray(preds, jnp.float32)
    t = jnp.asarray(targets, jnp.float32)
    lp = (-(t[None, ...] - p) ** 2 / (2.0 * sigma * sigma)
          - math.log(sigma) - 0.5 * math.log(2.0 * math.pi))
    log_like = jnp.sum(lp)
    return (log_va_poster - log_prior) / batch_num - log_like / p.shape[0]


if __name__ == "__main__":
    key = jax.random.PRNGKey(0)
    batch_num, noise_tol = 10, 0.1
    log_prior = jnp.float32(-37.25)
    log_va_poster = jnp.float32(-31.50)

    # 1) Small BNN-regression shapes, default tiling (single block, full-extent dims).
    k_t, k_n = jax.random.split(key)
    S, B, D = 3, 8, 4
    targets = jax.random.normal(k_t, (B, D), dtype=jnp.float32)
    preds = targets[None] + 0.05 * jax.random.normal(k_n, (S, B, D), dtype=jnp.float32)
    loss = regression_elbo_loss((preds, log_prior, log_va_poster), targets,
                                batch_num=batch_num, noise_tol=noise_tol)
    loss = jax.block_until_ready(loss)
    ref = _reference(preds, float(log_prior), float(log_va_poster), targets,
                     batch_num=batch_num, noise_tol=noise_tol)
    assert jnp.allclose(loss, ref, rtol=1e-4, atol=1e-3), (loss, ref)

    # 2) Ragged sample + lane tails with tiny forced tiles: multi-chunk grid,
    #    sample-chunk-parallel orientation, both in-kernel masks exercised.
    k_t2, k_n2 = jax.random.split(jax.random.fold_in(key, 1))
    S2, B2, D2 = 19, 5, 52
    targets2 = jax.random.normal(k_t2, (B2, D2), dtype=jnp.float32)
    preds2 = targets2[None] + 0.05 * jax.random.normal(k_n2, (S2, B2, D2),
                                                       dtype=jnp.float32)
    loss2 = regression_elbo_loss((preds2, log_prior, log_va_poster), targets2,
                                 batch_num=batch_num, noise_tol=noise_tol,
                                 tile_bytes=4096, lane_cap=128)
    loss2 = jax.block_until_ready(loss2)
    ref2 = _reference(preds2, float(log_prior), float(log_va_poster), targets2,
                      batch_num=batch_num, noise_tol=noise_tol)
    assert jnp.allclose(loss2, ref2, rtol=1e-4, atol=1e-3), (loss2, ref2)

    # 3) bf16 predictions (native-dtype streaming), lane-chunk-parallel orientation,
    #    list-of-samples input path.
    k_t3, k_n3 = jax.random.split(jax.random.fold_in(key, 2))
    S3, B3, D3 = 3, 12, 25
    targets3 = jax.random.normal(k_t3, (B3, D3), dtype=jnp.float32)
    preds3 = (targets3[None] + 0.05 * jax.random.normal(k_n3, (S3, B3, D3),
                                                        dtype=jnp.float32)
              ).astype(jnp.bfloat16)
    preds3_list = [preds3[i] for i in range(S3)]
    loss3 = regression_elbo_loss((preds3_list, log_prior, log_va_poster), targets3,
                                 batch_num=batch_num, noise_tol=noise_tol,
                                 tile_bytes=2048, lane_cap=128)
    loss3 = jax.block_until_ready(loss3)
    ref3 = _reference(preds3.astype(jnp.float32), float(log_prior),
                      float(log_va_poster), targets3,
                      batch_num=batch_num, noise_tol=noise_tol)
    assert jnp.allclose(loss3, ref3, rtol=1e-3, atol=1e-2), (loss3, ref3)

    print("KERNEL_OK")
</pallas_src>

<mosaic_0001>
module attributes {stable_mosaic.version = 11 : i64} {
  func.func @kernel(%arg0: i32, %arg1: i32, %arg2: memref<3x32xf32, #tpu.memory_space<vmem>>, %arg3: memref<1x32xf32, #tpu.memory_space<vmem>>, %arg4: memref<1x1x32xf32, #tpu.memory_space<vmem>>) attributes {dimension_semantics = [#tpu.dimension_semantics<parallel>, #tpu.dimension_semantics<arbitrary>], iteration_bounds = array<i64: 1, 1>, scalar_prefetch = 0 : i64, scratch_operands = 0 : i64, tpu.core_type = #tpu.core_type<tc>, window_params = [{transform_indices = @transform_0, window_bounds = array<i64: 3, 32>}, {transform_indices = @transform_1, window_bounds = array<i64: 1, 32>}, {transform_indices = @transform_2, window_bounds = array<i64: 1, 1, 32>}]} {
    %c0_i32 = arith.constant 0 : i32
    %0 = arith.cmpi eq, %arg1, %c0_i32 : i32
    %1 = arith.extui %0 : i1 to i32
    %c0_i32_0 = arith.constant 0 : i32
    %2 = arith.cmpi ne, %1, %c0_i32_0 : i32
    scf.if %2 {
      %cst_10 = arith.constant 0.000000e+00 : f32
      %14 = vector.broadcast %cst_10 : f32 to vector<1x1x32xf32>
      %c0_11 = arith.constant 0 : index
      %c0_12 = arith.constant 0 : index
      %c0_13 = arith.constant 0 : index
      %15 = vector.load %arg4[%c0_11, %c0_12, %c0_13] : memref<1x1x32xf32, #tpu.memory_space<vmem>>, vector<1x1x32xf32>
      tpu.vector_store %arg4[%c0_11, %c0_12, %c0_13], %14 {strides = array<i32>} : memref<1x1x32xf32, #tpu.memory_space<vmem>>, vector<1x1x32xf32>,
    } else {
    }
    %c0 = arith.constant 0 : index
    %c0_1 = arith.constant 0 : index
    %3 = vector.load %arg2[%c0, %c0_1] : memref<3x32xf32, #tpu.memory_space<vmem>>, vector<3x32xf32>
    %c0_2 = arith.constant 0 : index
    %c0_3 = arith.constant 0 : index
    %4 = vector.load %arg3[%c0_2, %c0_3] : memref<1x32xf32, #tpu.memory_space<vmem>>, vector<1x32xf32>
    %5 = vector.broadcast %4 : vector<1x32xf32> to vector<3x32xf32>
    %6 = arith.subf %3, %5 : vector<3x32xf32>
    %7 = arith.mulf %6, %6 : vector<3x32xf32>
    %c0_4 = arith.constant 0 : index
    %c0_5 = arith.constant 0 : index
    %c0_6 = arith.constant 0 : index
    %8 = vector.load %arg4[%c0_4, %c0_5, %c0_6] : memref<1x1x32xf32, #tpu.memory_space<vmem>>, vector<1x1x32xf32>
    %cst = arith.constant dense<0.000000e+00> : vector<32xf32>
    %9 = vector.multi_reduction <add>, %7, %cst [0] : vector<3x32xf32> to vector<32xf32>
    %10 = vector.shape_cast %9 : vector<32xf32> to vector<1x32xf32>
    %11 = vector.shape_cast %10 : vector<1x32xf32> to vector<1x1x32xf32>
    %12 = arith.addf %8, %11 : vector<1x1x32xf32>
    %c0_7 = arith.constant 0 : index
    %c0_8 = arith.constant 0 : index
    %c0_9 = arith.constant 0 : index
    %13 = vector.load %arg4[%c0_7, %c0_8, %c0_9] : memref<1x1x32xf32, #tpu.memory_space<vmem>>, vector<1x1x32xf32>
    tpu.vector_store %arg4[%c0_7, %c0_8, %c0_9], %12 {strides = array<i32>} : memref<1x1x32xf32, #tpu.memory_space<vmem>>, vector<1x1x32xf32>,
    return
  }
  func.func @transform_0(%arg0: i32, %arg1: i32) -> (i32, i32) {
    %c0_i32 = arith.constant 0 : i32
    return %arg1, %arg0 : i32, i32
  }
  func.func @transform_1(%arg0: i32, %arg1: i32) -> (i32, i32) {
    %c0_i32 = arith.constant 0 : i32
    %c0_i32_0 = arith.constant 0 : i32
    return %c0_i32, %arg0 : i32, i32
  }
  func.func @transform_2(%arg0: i32, %arg1: i32) -> (i32, i32, i32) {
    %c0_i32 = arith.constant 0 : i32
    %c0_i32_0 = arith.constant 0 : i32
    %c0_i32_1 = arith.constant 0 : i32
    return %arg0, %c0_i32, %c0_i32_0 : i32, i32, i32
  }
}

</mosaic_0001>

<bundles_post_ra>
// kernel: tpu_custom_call.1
= control target key start
LH: loop header
LB: loop body
LE: loop exit
PB: predicated region body
PF: predicated region fallthrough
CT: control target
= control target key end

     0   :  { %7 = vsyncpa [#allocation3], 0  ;;  %s166_s0 = inlined_call_operand.hbm [shape: f32[3,32], index: 0, kind: input, shape index: {}]   ;;  %s167_s1 = inlined_call_operand.vmem [shape: f32[1,32], index: 1, kind: input, shape index: {}]   ;;  %s168_s2 = inlined_call_operand.hbm [shape: f32[1,1,32], index: 2, kind: output, shape index: {}]  }
   0x1   :  { %8 = vsyncpa [#allocation4], 0  ;;  %s119_s9 = smov [#allocation2]   ;;  %s71_s13 = scalar_lea.hbm %s166_s0, 64 }
   0x2   :  { %s15_s10 = sshll.u32 %s119_s9, 4  ;;  %p72_p0 = scmp.ne.s32.totalorder %s166_s0, %s71_s13  ;;  %s16_s10 = int_to_ptr.vmem [resolvable:$true] %s15_s10 }
   0x3   :  { %p75_p1 = scmp.lt.u32.totalorder %s71_s13, %s166_s0 }
   0x5   :  { %p77_p2 = pnand %p75_p1, %p72_p0 }
   0x7   :  { %80 = shalt.err (!%p77_p2)
}
   0x8   :  { %s81_s18 = scalar_lea.vmem %s16_s10, 64  ;;  %p86_p4 = scmp.lt.s32.totalorder %s16_s10, %s16_s10 }
   0x9   :  { %p82_p3 = scmp.ne.s32.totalorder %s16_s10, %s81_s18  ;;  %p87_p5 = scmp.lt.s32.totalorder %s81_s18, %s81_s18 }
   0xb   :  { %p88_p6 = por %p87_p5, %p86_p4 }
   0xd   :  { %p89_p7 = pnand %p88_p6, %p82_p3 }
   0xf   :  { %92 = shalt.err (!%p89_p7)
}
  0x10   :  { %18 = dma.hbm_to_vmem [thread:$0]  %s166_s0, 64, %s16_s10, [#allocation3]  }
  0x11   :  { %115 = dma.done.wait [#allocation3], 64  }
  0x12   :  { %116 = vsyncadd [#allocation3], 4294967232  ;;  %vm28_vm0 = vcmask 253952   ;;  %v120_v0 = vmov 0.0   ;;  %v30_v1 = vld [vmem:[#allocation2] sm:$0x7] }
  0x13   :  { %29 = vst.msk [vmem:[#allocation5] sm:$0x1] %vm28_vm0, %v120_v0  ;;  %v67_v2 = vld [vmem:[%s167_s1] ss:$0 sm:$0xff]  ;;  %vm41_vm1 = vcmask 256000   ;;  %s121_s0 = smov [#allocation5]  }
  0x14   :  { %v38_v3 = vsub.f32 %v30_v1, %v67_v2  ;;  %s58_s23 = sshll.u32 %s121_s0, 4  ;;  %s59_s23 = int_to_ptr.vmem [resolvable:$true] %s58_s23 }
  0x15   :  { %s93_s24 = scalar_lea.vmem %s59_s23, 16  ;;  %s97_s1 = scalar_lea.vmem %s59_s23, 32 }
  0x16   :  { %v39_v4 = vmul.f32 %v38_v3, %v38_v3  ;;  %p94_p8 = scmp.ne.s32.totalorder %s59_s23, %s93_s24  ;;  %p98_p9 = scmp.lt.s32.totalorder %s59_s23, %s59_s23 }
  0x17   :  { %p99_p10 = scmp.lt.s32.totalorder %s97_s1, %s93_s24 }
  0x18   :  { %v42_v5 = vsel %vm41_vm1, %v39_v4, 0.0 }
  0x19   :  { %v43_v6 = vrot.slane %v42_v5, 4  ;;  %p100_p11 = por %p99_p10, %p98_p9 }
  0x1a   :  { %v40_v11 = vld [vmem:[#allocation5] sm:$0x1] }
  0x1b   :  { %v44_v7 = vadd.f32 %v43_v6, %v42_v5  ;;  %p101_p12 = pnand %p100_p11, %p94_p8 }
  0x1d   :  { %v45_v8 = vrot.slane %v44_v7, 2 }
  0x1f   :  { %v46_v9 = vadd.f32 %v45_v8, %v44_v7 }
  0x21   :  { %v47_v10 = vrot.slane %v46_v9, 1 }
  0x23   :  { %v48_v12 = vadd.f32 %v47_v10, %v46_v9 }
  0x25   :  { %v49_v13 = vadd.f32 %v48_v12, %v40_v11 }
  0x27   :  { %51 = vst.msk [vmem:[#allocation5] sm:$0x1] %vm28_vm0, %v49_v13 }
  0x28   :  { %104 = shalt.err (!%p101_p12)
}
  0x29   :  { %s105_s27 = scalar_lea.hbm %s168_s2, 16 }
  0x2a   :  { %p106_p13 = scmp.ne.s32.totalorder %s168_s2, %s105_s27  ;;  %p109_p0 = scmp.lt.u32.totalorder %s105_s27, %s168_s2 }
  0x2c   :  { %p111_p1 = pnand %p109_p0, %p106_p13 }
  0x2e   :  { %114 = shalt.err (!%p111_p1)
}
  0x2f   :  { %61 = dma.vmem_to_hbm [thread:$0]  %s59_s23, 16, %s168_s2, [#allocation4]  }
  0x30   :  { %117 = dma.done.wait [#allocation4], 16  }
  0x31   :  { %118 = vsyncadd [#allocation4], 4294967280 }
  0x32   :  { %65 = vsyncpa [#allocation3], 1 }
  0x33   :  { %66 = vsyncpa [#allocation4], 1 }

</bundles_post_ra>
